<compile_context>
chip_gen: v7x
topology: tpu7x:2x2x1
jax: 0.10.0
libtpu: 0.0.40
codegen_flags: <defaults>
</compile_context>

<pallas_src>
import functools
import math

import jax
import jax.numpy as jnp
from jax.experimental import pallas as pl
from jax.experimental.pallas import tpu as pltpu


_BN_EPS = 1e-5
_LANE_TILE_CAP = 512                 # multiple of 128 -> lane-dense blocks
_VMEM_FALLBACK = 64 * 1024 * 1024    # conservative (v7x-sized) default


def _round_up(x, m):
    return -(-x // m) * m


def _next_pow2(n):
    return 1 << max(3, int(n - 1).bit_length())   # at least 8


def _vmem_capacity_bytes():
    try:
        return int(getattr(pltpu.get_tpu_info(), "vmem_capacity_bytes",
                           _VMEM_FALLBACK))
    except Exception:
        return _VMEM_FALLBACK


def _pad_lane_dim(d, cap=_LANE_TILE_CAP):
    """Pad a feature dim to a multiple of 128; return (padded_dim, tile)."""
    p = _round_up(d, 128)
    if p <= cap:
        return p, p
    return _round_up(d, cap), cap


def _batch_tiling(n, cap):
    """Bucketed batch padding (multiple-of-8 / pow2) -> (n_pad, batch_tile)."""
    if n <= cap:
        p = _next_pow2(n)
        return p, p
    return _round_up(n, cap), cap


# --------------------------------------------------------------------------
# Kernels
# --------------------------------------------------------------------------
def _fused_mlp_kernel(num_hidden, n_ref, x_ref, *refs):
    """Whole MLP in one invocation (no grid): x and all weights resident in
    VMEM; per hidden layer: bf16 matmul -> exact batch-stat BN -> ReLU -> bf16;
    final layer: bf16 matmul + bias -> f32 output."""
    o_ref = refs[-1]
    params = refs[:-1]

    n_true = n_ref[0]
    inv_n = 1.0 / n_true.astype(jnp.float32)

    h = x_ref[...]                                  # (n_pad, in_pad) bf16
    row_mask = None
    idx = 0
    for _ in range(num_hidden):
        w_ref, g_ref, b_ref = params[idx], params[idx + 1], params[idx + 2]
        idx += 3
        # Hidden Linear bias dropped: BN subtracts the column mean, so a
        # per-column constant cancels exactly; padded rows of y stay zero.
        y = jnp.dot(h, w_ref[...], preferred_element_type=jnp.float32)
        mean = jnp.sum(y, axis=0, keepdims=True) * inv_n
        msq = jnp.sum(y * y, axis=0, keepdims=True) * inv_n
        var = jnp.maximum(msq - mean * mean, 0.0)   # clamp (review item)
        scale = g_ref[...] * jax.lax.rsqrt(var + _BN_EPS)
        shift = b_ref[...] - mean * scale
        act = jnp.maximum(y * scale + shift, 0.0)
        if row_mask is None:
            rows = jax.lax.broadcasted_iota(jnp.int32, act.shape, 0)
            row_mask = rows < n_true
        act = jnp.where(row_mask, act, 0.0)         # keep padded rows zero
        h = act.astype(jnp.bfloat16)

    w_ref, bias_ref = params[idx], params[idx + 1]
    o_ref[...] = (jnp.dot(h, w_ref[...], preferred_element_type=jnp.float32)
                  + bias_ref[...])


def _linear_stats_kernel(x_ref, w_ref, y_ref, s1_ref, s2_ref,
                         acc_ref, sum_ref, ssq_ref):
    """Pass A of the batch-tiled path: y = x @ W (bf16 out) plus per-column
    sum / sum-of-squares accumulated across batch tiles.
    Grid = (dout tiles j, batch tiles i, K tiles k)."""
    i = pl.program_id(1)
    k = pl.program_id(2)
    last_i = pl.num_programs(1) - 1
    last_k = pl.num_programs(2) - 1

    @pl.when(jnp.logical_and(i == 0, k == 0))
    def _():
        sum_ref[...] = jnp.zeros_like(sum_ref)
        ssq_ref[...] = jnp.zeros_like(ssq_ref)

    @pl.when(k == 0)
    def _():
        acc_ref[...] = jnp.zeros_like(acc_ref)

    acc_ref[...] += jnp.dot(x_ref[...], w_ref[...],
                            preferred_element_type=jnp.float32)

    @pl.when(k == last_k)
    def _():
        y = acc_ref[...]
        y_ref[...] = y.astype(y_ref.dtype)
        # Padded rows of x are zero and there is no bias, so padded rows of y
        # are exactly zero and contribute nothing to the sums.
        sum_ref[...] += jnp.sum(y, axis=0, keepdims=True)
        ssq_ref[...] += jnp.sum(y * y, axis=0, keepdims=True)

    @pl.when(jnp.logical_and(i == last_i, k == last_k))
    def _():
        s1_ref[...] = sum_ref[...]
        s2_ref[...] = ssq_ref[...]


def _bn_relu_kernel(n_ref, y_ref, s1_ref, s2_ref, g_ref, b_ref, o_ref):
    """Pass B of the batch-tiled path: normalize with exact batch stats, ReLU,
    mask padded rows, store bf16.  Grid = (batch tiles i, dout tiles j)."""
    n_true = n_ref[0]
    inv_n = 1.0 / n_true.astype(jnp.float32)

    mean = s1_ref[...] * inv_n
    msq = s2_ref[...] * inv_n
    var = jnp.maximum(msq - mean * mean, 0.0)
    scale = g_ref[...] * jax.lax.rsqrt(var + _BN_EPS)
    shift = b_ref[...] - mean * scale

    y = y_ref[...].astype(jnp.float32)
    out = jnp.maximum(y * scale + shift, 0.0)

    i = pl.program_id(0)
    tm = y_ref.shape[0]
    rows = i * tm + jax.lax.broadcasted_iota(jnp.int32, out.shape, 0)
    out = jnp.where(rows < n_true, out, 0.0)        # keep padded rows zero
    o_ref[...] = out.astype(o_ref.dtype)


def _linear_kernel(x_ref, w_ref, b_ref, o_ref):
    """Plain Linear (x @ W + b): accumulate directly into the f32 output block
    (no scratch).  Grid = (batch tiles i, dout tiles j, K tiles k)."""
    k = pl.program_id(2)

    @pl.when(k == 0)
    def _():
        o_ref[...] = jnp.zeros_like(o_ref) + b_ref[...]

    o_ref[...] += jnp.dot(x_ref[...], w_ref[...],
                          preferred_element_type=jnp.float32)


# --------------------------------------------------------------------------
# pallas_call wrappers
# --------------------------------------------------------------------------
def fused_mlp_forward(n_arr, xp, hidden_params, final_params, *,
                      out_pad, vmem_limit):
    num_hidden = len(hidden_params)
    kernel = functools.partial(_fused_mlp_kernel, num_hidden)
    args = [n_arr, xp]
    in_specs = [pl.BlockSpec(memory_space=pltpu.MemorySpace.SMEM),
                pl.BlockSpec(memory_space=pltpu.MemorySpace.VMEM)]
    for w, g, b in hidden_params:
        args += [w, g, b]
        in_specs += [pl.BlockSpec(memory_space=pltpu.MemorySpace.VMEM)] * 3
    w_last, b_last = final_params
    args += [w_last, b_last]
    in_specs += [pl.BlockSpec(memory_space=pltpu.MemorySpace.VMEM)] * 2

    n_pad = xp.shape[0]
    return pl.pallas_call(
        kernel,
        out_shape=jax.ShapeDtypeStruct((n_pad, out_pad), jnp.float32),
        in_specs=in_specs,
        out_specs=pl.BlockSpec(memory_space=pltpu.MemorySpace.VMEM),
        compiler_params=pltpu.CompilerParams(vmem_limit_bytes=vmem_limit),
    )(*args)


def linear_with_stats(x, w_t, *, tm, tn, tk, vmem_limit):
    n_pad, din_pad = x.shape
    dout_pad = w_t.shape[1]
    return pl.pallas_call(
        _linear_stats_kernel,
        out_shape=(jax.ShapeDtypeStruct((n_pad, dout_pad), jnp.bfloat16),
                   jax.ShapeDtypeStruct((1, dout_pad), jnp.float32),
                   jax.ShapeDtypeStruct((1, dout_pad), jnp.float32)),
        grid=(dout_pad // tn, n_pad // tm, din_pad // tk),
        in_specs=[
            pl.BlockSpec((tm, tk), lambda j, i, k: (i, k)),
            pl.BlockSpec((tk, tn), lambda j, i, k: (k, j)),
        ],
        out_specs=(
            pl.BlockSpec((tm, tn), lambda j, i, k: (i, j)),
            pl.BlockSpec((1, tn), lambda j, i, k: (0, j)),
            pl.BlockSpec((1, tn), lambda j, i, k: (0, j)),
        ),
        scratch_shapes=[pltpu.VMEM((tm, tn), jnp.float32),
                        pltpu.VMEM((1, tn), jnp.float32),
                        pltpu.VMEM((1, tn), jnp.float32)],
        compiler_params=pltpu.CompilerParams(
            dimension_semantics=("parallel", "arbitrary", "arbitrary"),
            vmem_limit_bytes=vmem_limit),
    )(x, w_t)


def bn_relu(n_arr, y, s1, s2, gamma, beta, *, tm, tn, vmem_limit):
    n_pad, dout_pad = y.shape
    return pl.pallas_call(
        _bn_relu_kernel,
        out_shape=jax.ShapeDtypeStruct((n_pad, dout_pad), jnp.bfloat16),
        grid=(n_pad // tm, dout_pad // tn),
        in_specs=[
            pl.BlockSpec(memory_space=pltpu.MemorySpace.SMEM),
            pl.BlockSpec((tm, tn), lambda i, j: (i, j)),
            pl.BlockSpec((1, tn), lambda i, j: (0, j)),
            pl.BlockSpec((1, tn), lambda i, j: (0, j)),
            pl.BlockSpec((1, tn), lambda i, j: (0, j)),
            pl.BlockSpec((1, tn), lambda i, j: (0, j)),
        ],
        out_specs=pl.BlockSpec((tm, tn), lambda i, j: (i, j)),
        compiler_params=pltpu.CompilerParams(
            dimension_semantics=("parallel", "parallel"),
            vmem_limit_bytes=vmem_limit),
    )(n_arr, y, s1, s2, gamma, beta)


def tiled_linear(x, w_t, b, *, tm, tn, tk, vmem_limit):
    n_pad, din_pad = x.shape
    dout_pad = w_t.shape[1]
    return pl.pallas_call(
        _linear_kernel,
        out_shape=jax.ShapeDtypeStruct((n_pad, dout_pad), jnp.float32),
        grid=(n_pad // tm, dout_pad // tn, din_pad // tk),
        in_specs=[
            pl.BlockSpec((tm, tk), lambda i, j, k: (i, k)),
            pl.BlockSpec((tk, tn), lambda i, j, k: (k, j)),
            pl.BlockSpec((1, tn), lambda i, j, k: (0, j)),
        ],
        out_specs=pl.BlockSpec((tm, tn), lambda i, j, k: (i, j)),
        compiler_params=pltpu.CompilerParams(
            dimension_semantics=("parallel", "parallel", "arbitrary"),
            vmem_limit_bytes=vmem_limit),
    )(x, w_t, b)


# --------------------------------------------------------------------------
# MLP module (parameter construction + forward orchestration)
# --------------------------------------------------------------------------
class MLP:
    def __init__(self, num_layers, input_dim, hidden_dim, output_dim, key,
                 use_fused=True):
        if num_layers < 1:
            raise ValueError("number of layers should be positive!")
        self.num_layers = num_layers
        self.linear_or_not = num_layers == 1
        self.input_dim = input_dim
        self.hidden_dim = hidden_dim
        self.output_dim = output_dim
        self._use_fused = use_fused

        self.in_pad, self.tk_in = _pad_lane_dim(input_dim)
        self.hid_pad, self.t_hid = _pad_lane_dim(hidden_dim)
        self.out_pad, self.tn_out = _pad_lane_dim(output_dim)

        # Per-generation VMEM budgets (review item).
        cap = _vmem_capacity_bytes()
        self._vmem_limit = min(int(cap * 3 // 4), 100 * 1024 * 1024)
        self._batch_cap = 512 if cap >= 96 * 1024 * 1024 else 256
        self._fused_budget = cap // 2

        def init_linear(k, fan_in, fan_out, fan_in_pad, fan_out_pad):
            kw, kb = jax.random.split(k)
            bound = 1.0 / math.sqrt(fan_in)
            w = jax.random.uniform(kw, (fan_out, fan_in), jnp.float32,
                                   minval=-bound, maxval=bound)
            b = jax.random.uniform(kb, (fan_out,), jnp.float32,
                                   minval=-bound, maxval=bound)
            # Pre-transpose to (in, out), zero-pad lane-dense, cast to bf16
            # once at init (halves weight DMA bytes).
            w_t = jnp.zeros((fan_in_pad, fan_out_pad), jnp.float32)
            w_t = w_t.at[:fan_in, :fan_out].set(w.T)
            b_p = jnp.zeros((1, fan_out_pad), jnp.float32)
            b_p = b_p.at[0, :fan_out].set(b)
            return w_t.astype(jnp.bfloat16), b_p, (w, b)

        self.layers = []        # (padded bf16 W^T, padded f32 bias)
        self._ref_params = []   # unpadded f32 (w, b) for the reference check
        if self.linear_or_not:
            w_t, b_p, ref = init_linear(key, input_dim, output_dim,
                                        self.in_pad, self.out_pad)
            self.layers.append((w_t, b_p))
            self._ref_params.append(ref)
            self.batch_norms = []
        else:
            keys = jax.random.split(key, num_layers)
            dims = ([(input_dim, hidden_dim, self.in_pad, self.hid_pad)]
                    + [(hidden_dim, hidden_dim, self.hid_pad, self.hid_pad)]
                    * (num_layers - 2)
                    + [(hidden_dim, output_dim, self.hid_pad, self.out_pad)])
            for k_i, (fi, fo, fip, fop) in zip(keys, dims):
                w_t, b_p, ref = init_linear(k_i, fi, fo, fip, fop)
                self.layers.append((w_t, b_p))
                self._ref_params.append(ref)
            # BatchNorm1d default init: gamma=1, beta=0 (padded columns zero).
            g = jnp.zeros((1, self.hid_pad), jnp.float32)
            g = g.at[0, :hidden_dim].set(1.0)
            be = jnp.zeros((1, self.hid_pad), jnp.float32)
            self.batch_norms = [(g, be) for _ in range(num_layers - 1)]

    # Conservative VMEM estimate of the fully-fused kernel.
    def _fused_bytes(self, n_pad):
        w_bytes = sum(int(w.size) * 2 + int(b.size) * 4 for w, b in self.layers)
        bn_bytes = sum(int(g.size) * 4 + int(b.size) * 4
                       for g, b in self.batch_norms)
        max_feat = max(self.in_pad, self.hid_pad, self.out_pad)
        act_bytes = n_pad * (2 * self.in_pad + 4 * self.out_pad + 12 * max_feat)
        return w_bytes + bn_bytes + act_bytes

    def _layered_forward(self, n_arr, xp, tm):
        h = xp
        for layer in range(self.num_layers - 1):
            w_t, _bias_unused = self.layers[layer]   # bias absorbed by BN
            g, be = self.batch_norms[layer]
            tk = self.tk_in if layer == 0 else self.t_hid
            y, s1, s2 = linear_with_stats(h, w_t, tm=tm, tn=self.t_hid, tk=tk,
                                          vmem_limit=self._vmem_limit)
            h = bn_relu(n_arr, y, s1, s2, g, be, tm=tm, tn=self.t_hid,
                        vmem_limit=self._vmem_limit)
        w_t, b_p = self.layers[-1]
        return tiled_linear(h, w_t, b_p, tm=tm, tn=self.tn_out, tk=self.t_hid,
                            vmem_limit=self._vmem_limit)

    def __call__(self, x):
        n = x.shape[0]
        n_pad, tm = _batch_tiling(n, self._batch_cap)
        # bf16 activations end-to-end: cast + pad once.
        xp = jnp.pad(x.astype(jnp.bfloat16),
                     ((0, n_pad - n), (0, self.in_pad - self.input_dim)))

        if self.linear_or_not:
            w_t, b_p = self.layers[0]
            out = tiled_linear(xp, w_t, b_p, tm=tm, tn=self.tn_out,
                               tk=self.tk_in, vmem_limit=self._vmem_limit)
            return out[:n, :self.output_dim]

        n_arr = jnp.full((1,), n, dtype=jnp.int32)   # runtime n_true (SMEM)
        if self._use_fused and self._fused_bytes(n_pad) <= self._fused_budget:
            hidden = [(self.layers[l][0],) + self.batch_norms[l]
                      for l in range(self.num_layers - 1)]
            out = fused_mlp_forward(n_arr, xp, hidden, self.layers[-1],
                                    out_pad=self.out_pad,
                                    vmem_limit=self._vmem_limit)
        else:
            out = self._layered_forward(n_arr, xp, tm)
        return out[:n, :self.output_dim]

    # Pure-JAX reference (training-mode BN, biased variance).  Mirrors the
    # kernel's bf16 storage of weights / activations so only matmul rounding
    # differs.
    def reference(self, x):
        def lin(h, idx):
            w, b = self._ref_params[idx]
            w = w.astype(jnp.bfloat16).astype(jnp.float32)
            return h @ w.T + b

        h = x.astype(jnp.bfloat16).astype(jnp.float32)
        if self.linear_or_not:
            return lin(h, 0)
        for layer in range(self.num_layers - 1):
            y = lin(h, layer)
            mean = jnp.mean(y, axis=0, keepdims=True)
            var = jnp.mean((y - mean) ** 2, axis=0, keepdims=True)
            h = jnp.maximum((y - mean) * jax.lax.rsqrt(var + _BN_EPS), 0.0)
            h = h.astype(jnp.bfloat16).astype(jnp.float32)
        return lin(h, self.num_layers - 1)


# --------------------------------------------------------------------------
if __name__ == "__main__":
    key = jax.random.PRNGKey(0)
    k_x, k_params = jax.random.split(key)
    num_layers, input_dim, hidden_dim, output_dim = 3, 16, 32, 8
    TOL = 5e-2

    mlp = MLP(num_layers, input_dim, hidden_dim, output_dim, k_params)

    # 1) sublane-aligned batch -> fully-fused whole-MLP kernel
    x = jax.random.normal(k_x, (8, input_dim), jnp.float32)
    out = jax.block_until_ready(mlp(x))
    assert out.shape == (8, output_dim), out.shape
    err = float(jnp.max(jnp.abs(out - mlp.reference(x))))
    assert err < TOL, err

    # 2) ragged batch (row padding + runtime n_true) -> fused path
    x2 = jax.random.normal(k_x, (13, input_dim), jnp.float32)
    out2 = jax.block_until_ready(mlp(x2))
    assert out2.shape == (13, output_dim), out2.shape
    err2 = float(jnp.max(jnp.abs(out2 - mlp.reference(x2))))
    assert err2 < TOL, err2

    # 3) batch-tiled two-pass BN fallback, forced at small shapes
    mlp_layered = MLP(num_layers, input_dim, hidden_dim, output_dim, k_params,
                      use_fused=False)
    out3 = jax.block_until_ready(mlp_layered(x2))
    assert out3.shape == (13, output_dim), out3.shape
    err3 = float(jnp.max(jnp.abs(out3 - mlp_layered.reference(x2))))
    assert err3 < TOL, err3

    # 4) num_layers == 1 (pure linear) branch
    mlp1 = MLP(1, input_dim, hidden_dim, output_dim, k_params)
    out1 = jax.block_until_ready(mlp1(x))
    assert out1.shape == (8, output_dim), out1.shape
    err1 = float(jnp.max(jnp.abs(out1 - mlp1.reference(x))))
    assert err1 < TOL, err1

    print("KERNEL_OK")
</pallas_src>

<mosaic_0001>
module attributes {stable_mosaic.version = 11 : i64} {
  func.func @_fused_mlp_kernel(%arg0: memref<1xi32, #tpu.memory_space<smem>>, %arg1: memref<8x128xbf16, #tpu.memory_space<vmem>>, %arg2: memref<128x128xbf16, #tpu.memory_space<vmem>>, %arg3: memref<1x128xf32, #tpu.memory_space<vmem>>, %arg4: memref<1x128xf32, #tpu.memory_space<vmem>>, %arg5: memref<128x128xbf16, #tpu.memory_space<vmem>>, %arg6: memref<1x128xf32, #tpu.memory_space<vmem>>, %arg7: memref<1x128xf32, #tpu.memory_space<vmem>>, %arg8: memref<128x128xbf16, #tpu.memory_space<vmem>>, %arg9: memref<1x128xf32, #tpu.memory_space<vmem>>, %arg10: memref<8x128xf32, #tpu.memory_space<vmem>>) attributes {dimension_semantics = [], scalar_prefetch = 0 : i64, scratch_operands = 0 : i64, tpu.core_type = #tpu.core_type<tc>} {
    %c0 = arith.constant 0 : index
    %0 = memref.load %arg0[%c0] : memref<1xi32, #tpu.memory_space<smem>>
    %1 = arith.sitofp %0 : i32 to f32
    %cst = arith.constant 1.000000e+00 : f32
    %2 = arith.divf %cst, %1 : f32
    %c0_0 = arith.constant 0 : index
    %c0_1 = arith.constant 0 : index
    %3 = vector.load %arg1[%c0_0, %c0_1] : memref<8x128xbf16, #tpu.memory_space<vmem>>, vector<8x128xbf16>
    %c0_2 = arith.constant 0 : index
    %c0_3 = arith.constant 0 : index
    %4 = vector.load %arg2[%c0_2, %c0_3] : memref<128x128xbf16, #tpu.memory_space<vmem>>, vector<128x128xbf16>
    %cst_4 = arith.constant dense<0.000000e+00> : vector<8x128xf32>
    %5 = tpu.matmul %3, %4, %cst_4 {dimension_numbers = #tpu.dot_dimension_numbers<[1], [0], [0], [1], [0, 0, 1, 1], [], []>} : vector<8x128xbf16>, vector<128x128xbf16>, vector<8x128xf32> -> vector<8x128xf32>
    %cst_5 = arith.constant dense<0.000000e+00> : vector<128xf32>
    %6 = vector.multi_reduction <add>, %5, %cst_5 [0] : vector<8x128xf32> to vector<128xf32>
    %7 = vector.shape_cast %6 : vector<128xf32> to vector<1x128xf32>
    %8 = vector.broadcast %2 : f32 to vector<1x128xf32>
    %9 = arith.mulf %7, %8 : vector<1x128xf32>
    %10 = arith.mulf %5, %5 : vector<8x128xf32>
    %cst_6 = arith.constant dense<0.000000e+00> : vector<128xf32>
    %11 = vector.multi_reduction <add>, %10, %cst_6 [0] : vector<8x128xf32> to vector<128xf32>
    %12 = vector.shape_cast %11 : vector<128xf32> to vector<1x128xf32>
    %13 = vector.broadcast %2 : f32 to vector<1x128xf32>
    %14 = arith.mulf %12, %13 : vector<1x128xf32>
    %15 = arith.mulf %9, %9 : vector<1x128xf32>
    %16 = arith.subf %14, %15 : vector<1x128xf32>
    %cst_7 = arith.constant 0.000000e+00 : f32
    %17 = vector.broadcast %cst_7 : f32 to vector<1x128xf32>
    %18 = arith.maximumf %16, %17 : vector<1x128xf32>
    %c0_8 = arith.constant 0 : index
    %c0_9 = arith.constant 0 : index
    %19 = vector.load %arg3[%c0_8, %c0_9] : memref<1x128xf32, #tpu.memory_space<vmem>>, vector<1x128xf32>
    %cst_10 = arith.constant 9.99999974E-6 : f32
    %20 = vector.broadcast %cst_10 : f32 to vector<1x128xf32>
    %21 = arith.addf %18, %20 : vector<1x128xf32>
    %22 = math.rsqrt %21 : vector<1x128xf32>
    %23 = arith.mulf %19, %22 : vector<1x128xf32>
    %c0_11 = arith.constant 0 : index
    %c0_12 = arith.constant 0 : index
    %24 = vector.load %arg4[%c0_11, %c0_12] : memref<1x128xf32, #tpu.memory_space<vmem>>, vector<1x128xf32>
    %25 = arith.mulf %9, %23 : vector<1x128xf32>
    %26 = arith.subf %24, %25 : vector<1x128xf32>
    %27 = vector.broadcast %23 : vector<1x128xf32> to vector<8x128xf32>
    %28 = arith.mulf %5, %27 : vector<8x128xf32>
    %29 = vector.broadcast %26 : vector<1x128xf32> to vector<8x128xf32>
    %30 = arith.addf %28, %29 : vector<8x128xf32>
    %cst_13 = arith.constant 0.000000e+00 : f32
    %31 = vector.broadcast %cst_13 : f32 to vector<8x128xf32>
    %32 = arith.maximumf %30, %31 : vector<8x128xf32>
    %33 = tpu.iota {dimensions = array<i32: 0>} : vector<8x128xi32>
    %34 = vector.broadcast %0 : i32 to vector<8x128xi32>
    %35 = arith.cmpi slt, %33, %34 : vector<8x128xi32>
    %cst_14 = arith.constant 0.000000e+00 : f32
    %36 = vector.broadcast %cst_14 : f32 to vector<8x128xf32>
    %37 = arith.select %35, %32, %36 : vector<8x128xi1>, vector<8x128xf32>
    %38 = arith.truncf %37 : vector<8x128xf32> to vector<8x128xbf16>
    %c0_15 = arith.constant 0 : index
    %c0_16 = arith.constant 0 : index
    %39 = vector.load %arg5[%c0_15, %c0_16] : memref<128x128xbf16, #tpu.memory_space<vmem>>, vector<128x128xbf16>
    %cst_17 = arith.constant dense<0.000000e+00> : vector<8x128xf32>
    %40 = tpu.matmul %38, %39, %cst_17 {dimension_numbers = #tpu.dot_dimension_numbers<[1], [0], [0], [1], [0, 0, 1, 1], [], []>} : vector<8x128xbf16>, vector<128x128xbf16>, vector<8x128xf32> -> vector<8x128xf32>
    %cst_18 = arith.constant dense<0.000000e+00> : vector<128xf32>
    %41 = vector.multi_reduction <add>, %40, %cst_18 [0] : vector<8x128xf32> to vector<128xf32>
    %42 = vector.shape_cast %41 : vector<128xf32> to vector<1x128xf32>
    %43 = vector.broadcast %2 : f32 to vector<1x128xf32>
    %44 = arith.mulf %42, %43 : vector<1x128xf32>
    %45 = arith.mulf %40, %40 : vector<8x128xf32>
    %cst_19 = arith.constant dense<0.000000e+00> : vector<128xf32>
    %46 = vector.multi_reduction <add>, %45, %cst_19 [0] : vector<8x128xf32> to vector<128xf32>
    %47 = vector.shape_cast %46 : vector<128xf32> to vector<1x128xf32>
    %48 = vector.broadcast %2 : f32 to vector<1x128xf32>
    %49 = arith.mulf %47, %48 : vector<1x128xf32>
    %50 = arith.mulf %44, %44 : vector<1x128xf32>
    %51 = arith.subf %49, %50 : vector<1x128xf32>
    %cst_20 = arith.constant 0.000000e+00 : f32
    %52 = vector.broadcast %cst_20 : f32 to vector<1x128xf32>
    %53 = arith.maximumf %51, %52 : vector<1x128xf32>
    %c0_21 = arith.constant 0 : index
    %c0_22 = arith.constant 0 : index
    %54 = vector.load %arg6[%c0_21, %c0_22] : memref<1x128xf32, #tpu.memory_space<vmem>>, vector<1x128xf32>
    %cst_23 = arith.constant 9.99999974E-6 : f32
    %55 = vector.broadcast %cst_23 : f32 to vector<1x128xf32>
    %56 = arith.addf %53, %55 : vector<1x128xf32>
    %57 = math.rsqrt %56 : vector<1x128xf32>
    %58 = arith.mulf %54, %57 : vector<1x128xf32>
    %c0_24 = arith.constant 0 : index
    %c0_25 = arith.constant 0 : index
    %59 = vector.load %arg7[%c0_24, %c0_25] : memref<1x128xf32, #tpu.memory_space<vmem>>, vector<1x128xf32>
    %60 = arith.mulf %44, %58 : vector<1x128xf32>
    %61 = arith.subf %59, %60 : vector<1x128xf32>
    %62 = vector.broadcast %58 : vector<1x128xf32> to vector<8x128xf32>
    %63 = arith.mulf %40, %62 : vector<8x128xf32>
    %64 = vector.broadcast %61 : vector<1x128xf32> to vector<8x128xf32>
    %65 = arith.addf %63, %64 : vector<8x128xf32>
    %cst_26 = arith.constant 0.000000e+00 : f32
    %66 = vector.broadcast %cst_26 : f32 to vector<8x128xf32>
    %67 = arith.maximumf %65, %66 : vector<8x128xf32>
    %cst_27 = arith.constant 0.000000e+00 : f32
    %68 = vector.broadcast %cst_27 : f32 to vector<8x128xf32>
    %69 = arith.select %35, %67, %68 : vector<8x128xi1>, vector<8x128xf32>
    %70 = arith.truncf %69 : vector<8x128xf32> to vector<8x128xbf16>
    %c0_28 = arith.constant 0 : index
    %c0_29 = arith.constant 0 : index
    %71 = vector.load %arg8[%c0_28, %c0_29] : memref<128x128xbf16, #tpu.memory_space<vmem>>, vector<128x128xbf16>
    %cst_30 = arith.constant dense<0.000000e+00> : vector<8x128xf32>
    %72 = tpu.matmul %70, %71, %cst_30 {dimension_numbers = #tpu.dot_dimension_numbers<[1], [0], [0], [1], [0, 0, 1, 1], [], []>} : vector<8x128xbf16>, vector<128x128xbf16>, vector<8x128xf32> -> vector<8x128xf32>
    %c0_31 = arith.constant 0 : index
    %c0_32 = arith.constant 0 : index
    %73 = vector.load %arg9[%c0_31, %c0_32] : memref<1x128xf32, #tpu.memory_space<vmem>>, vector<1x128xf32>
    %74 = vector.broadcast %73 : vector<1x128xf32> to vector<8x128xf32>
    %75 = arith.addf %72, %74 : vector<8x128xf32>
    %c0_33 = arith.constant 0 : index
    %c0_34 = arith.constant 0 : index
    %76 = vector.load %arg10[%c0_33, %c0_34] : memref<8x128xf32, #tpu.memory_space<vmem>>, vector<8x128xf32>
    tpu.vector_store %arg10[%c0_33, %c0_34], %75 {strides = array<i32>} : memref<8x128xf32, #tpu.memory_space<vmem>>, vector<8x128xf32>,
    return
  }
}

</mosaic_0001>

<bundles_post_ra>
// kernel: tpu_custom_call.1
= control target key start
LH: loop header
LB: loop body
LE: loop exit
PB: predicated region body
PF: predicated region fallthrough
CT: control target
= control target key end

     0   :  { %16 = vsyncpa [#allocation4], 0  ;;  %s1013_s0 = inlined_call_operand.<no memory space> [shape: s32[1], index: 0, kind: input, shape index: {}]   ;;  %s1014_s1 = inlined_call_operand.hbm [shape: bf16[8,128], index: 1, kind: input, shape index: {}]   ;;  %s1015_s2 = inlined_call_operand.hbm [shape: bf16[128,128], index: 2, kind: input, shape index: {}]   ;;  %s1016_s3 = inlined_call_operand.vmem [shape: f32[1,128], index: 3, kind: input, shape index: {}]   ;;  %s1017_s4 = inlined_call_operand.vmem [shape: f32[1,128], index: 4, kind: input, shape index: {}]   ;;  %s1018_s5 = inlined_call_operand.hbm [shape: bf16[128,128], index: 5, kind: input, shape index: {}]   ;;  %s1019_s6 = inlined_call_operand.vmem [shape: f32[1,128], index: 6, kind: input, shape index: {}]   ;;  %s1020_s7 = inlined_call_operand.vmem [shape: f32[1,128], index: 7, kind: input, shape index: {}]   ;;  %s1021_s8 = inlined_call_operand.hbm [shape: bf16[128,128], index: 8, kind: input, shape index: {}]   ;;  %s1022_s9 = inlined_call_operand.vmem [shape: f32[1,128], index: 9, kind: input, shape index: {}]   ;;  %s1023_s10 = inlined_call_operand.hbm [shape: f32[8,128], index: 10, kind: output, shape index: {}]  }
   0x1   :  { %17 = vsyncpa [#allocation7], 0 }
   0x2   :  { %18 = vsyncpa [#allocation10], 0 }
   0x3   :  { %19 = vsyncpa [#allocation5], 0  ;;  %s800_s13 = smov [#allocation6]   ;;  %s682_s17 = scalar_lea.hbm %s1015_s2, 1024 }
   0x4   :  { %s37_s14 = sshll.u32 %s800_s13, 4  ;;  %p683_p0 = scmp.ne.s32.totalorder %s1015_s2, %s682_s17  ;;  %s38_s14 = int_to_ptr.vmem [resolvable:$true] %s37_s14 }
   0x5   :  { %p686_p1 = scmp.lt.u32.totalorder %s682_s17, %s1015_s2 }
   0x7   :  { %p688_p2 = pnand %p686_p1, %p683_p0 }
   0x9   :  { %691 = shalt.err (!%p688_p2)
}
   0xa   :  { %s692_s22 = scalar_lea.vmem %s38_s14, 1024  ;;  %p697_p4 = scmp.lt.s32.totalorder %s38_s14, %s38_s14 }
   0xb   :  { %p693_p3 = scmp.ne.s32.totalorder %s38_s14, %s692_s22  ;;  %p698_p5 = scmp.lt.s32.totalorder %s692_s22, %s692_s22 }
   0xd   :  { %p699_p6 = por %p698_p5, %p697_p4 }
   0xf   :  { %p700_p7 = pnand %p699_p6, %p693_p3 }
  0x11   :  { %703 = shalt.err (!%p700_p7)
}
  0x12   :  { %s801_s23 = smov 64   ;;  %s802_s24 = smov 4  }
  0x13   :  { %43 = dma.hbm_to_vmem [thread:$0]  %s1015_s2, 1024, %s38_s14, [#allocation7], %s801_s23, %s801_s23, %s802_s24  }
  0x14   :  { %s803_s27 = smov [#allocation3]   ;;  %s804_s29 = smov [#allocation8]  }
  0x15   :  { %s28_s28 = sshll.u32 %s803_s27, 4  ;;  %s53_s30 = sshll.u32 %s804_s29, 4  ;;  %s29_s28 = int_to_ptr.vmem [resolvable:$true] %s28_s28  ;;  %s54_s30 = int_to_ptr.vmem [resolvable:$true] %s53_s30 }
  0x16   :  { %s704_s13 = scalar_lea.hbm %s1014_s1, 64 }
  0x17   :  { %p705_p8 = scmp.ne.s32.totalorder %s1014_s1, %s704_s13  ;;  %p708_p9 = scmp.lt.u32.totalorder %s704_s13, %s1014_s1 }
  0x19   :  { %p710_p10 = pnand %p708_p9, %p705_p8 }
  0x1b   :  { %713 = shalt.err (!%p710_p10)
}
  0x1c   :  { %s714_s2 = scalar_lea.vmem %s29_s28, 64  ;;  %p719_p12 = scmp.lt.s32.totalorder %s29_s28, %s29_s28 }
  0x1d   :  { %p715_p11 = scmp.ne.s32.totalorder %s29_s28, %s714_s2  ;;  %p720_p13 = scmp.lt.s32.totalorder %s714_s2, %s714_s2 }
  0x1f   :  { %p721_p0 = por %p720_p13, %p719_p12 }
  0x21   :  { %p722_p1 = pnand %p721_p0, %p715_p11 }
  0x23   :  { %725 = shalt.err (!%p722_p1)
}
  0x24   :  { %31 = dma.hbm_to_vmem [thread:$0]  %s1014_s1, 64, %s29_s28, [#allocation4]  }
  0x25   :  { %s726_s22 = scalar_lea.hbm %s1018_s5, 1024 }
  0x26   :  { %p727_p2 = scmp.ne.s32.totalorder %s1018_s5, %s726_s22  ;;  %p730_p3 = scmp.lt.u32.totalorder %s726_s22, %s1018_s5 }
  0x28   :  { %p732_p4 = pnand %p730_p3, %p727_p2 }
  0x2a   :  { %735 = shalt.err (!%p732_p4)
}
  0x2b   :  { %s736_s11 = scalar_lea.vmem %s54_s30, 1024  ;;  %p741_p6 = scmp.lt.s32.totalorder %s54_s30, %s54_s30 }
  0x2c   :  { %p737_p5 = scmp.ne.s32.totalorder %s54_s30, %s736_s11  ;;  %p742_p7 = scmp.lt.s32.totalorder %s736_s11, %s736_s11 }
  0x2e   :  { %p743_p8 = por %p742_p7, %p741_p6 }
  0x30   :  { %p744_p9 = pnand %p743_p8, %p737_p5 }
  0x32   :  { %747 = shalt.err (!%p744_p9)
}
  0x33   :  { %59 = dma.hbm_to_vmem [thread:$0]  %s1018_s5, 1024, %s54_s30, [#allocation7], %s801_s23, %s801_s23, %s802_s24  }
  0x34   :  { %s805_s12 = smov [#allocation9]   ;;  %s748_s17 = scalar_lea.hbm %s1021_s8, 1024 }
  0x35   :  { %s69_s13 = sshll.u32 %s805_s12, 4  ;;  %p749_p10 = scmp.ne.s32.totalorder %s1021_s8, %s748_s17  ;;  %s70_s13 = int_to_ptr.vmem [resolvable:$true] %s69_s13 }
  0x36   :  { %p752_p11 = scmp.lt.u32.totalorder %s748_s17, %s1021_s8 }
  0x38   :  { %p754_p12 = pnand %p752_p11, %p749_p10 }
  0x3a   :  { %757 = shalt.err (!%p754_p12)
}
  0x3b   :  { %s758_s20 = scalar_lea.vmem %s70_s13, 1024  ;;  %p763_p0 = scmp.lt.s32.totalorder %s70_s13, %s70_s13 }
  0x3c   :  { %p759_p13 = scmp.ne.s32.totalorder %s70_s13, %s758_s20  ;;  %p764_p1 = scmp.lt.s32.totalorder %s758_s20, %s758_s20 }
  0x3e   :  { %p765_p2 = por %p764_p1, %p763_p0 }
  0x40   :  { %p766_p3 = pnand %p765_p2, %p759_p13 }
  0x42   :  { %769 = shalt.err (!%p766_p3)
}
  0x43   :  { %75 = dma.hbm_to_vmem [thread:$0]  %s1021_s8, 1024, %s70_s13, [#allocation10], %s801_s23, %s801_s23, %s802_s24  }
  0x44   :  { %792 = dma.done.wait [#allocation4], 64  }
  0x45   :  { %793 = vsyncadd [#allocation4], 4294967232 }
  0x46   :  { %794 = dma.done.wait [#allocation7], 2048  }
  0x47   :  { %795 = vsyncadd [#allocation7], 4294965248 }
  0x48   :  { %796 = dma.done.wait [#allocation10], 1024  }
  0x49   :  { %797 = vsyncadd [#allocation10], 4294966272  ;;  %s92_s25 = scvt.s32.f32 %s1013_s0  ;;  %v806_v0 = vmov 0.0   ;;  %vm807_vm0 = vmmov 0   ;;  %v652_v2 = vld [vmem:[#allocation6] sm:$0xff]   ;;  %v653_v3 = vld [vmem:[#allocation6 + $0x8] sm:$0xff]   ;;  %v228_v44 = vlaneseq  ;;  %v244_v54 = vstv %s1013_s0 }
  0x4a   :  { %581 = vmatprep.subr.bf16.mxu0 %v806_v0  ;;  %597 = vmatprep.mubr.msk.bf16.mxu0 %vm807_vm0, %v806_v0  ;;  %v654_v5 = vld [vmem:[#allocation6 + $0x10] sm:$0xff]   ;;  %v655_v6 = vld [vmem:[#allocation6 + $0x18] sm:$0xff]   ;;  %v656_v7 = vld [vmem:[#allocation6 + $0x20] sm:$0xff]  }
  0x4b   :  { %v93_v1 = vstv %s92_s25  ;;  %601 = vmatprep.subr.bf16.mxu1 %v806_v0  ;;  %617 = vmatprep.mubr.msk.bf16.mxu1 %vm807_vm0, %v806_v0  ;;  %v657_v8 = vld [vmem:[#allocation6 + $0x28] sm:$0xff]   ;;  %v658_v9 = vld [vmem:[#allocation6 + $0x30] sm:$0xff]   ;;  %v659_v10 = vld [vmem:[#allocation6 + $0x38] sm:$0xff]   ;;  %v229_v45 = vshrl.u32 %v228_v44, 7 }
  0x4c   :  { %676 = vrcp.f32 %v93_v1  ;;  %582 = vmatpush3.bf16.msra.mxu0 %v652_v2  ;;  %v96_v11 = vld [vmem:[#allocation3] sm:$0xf]  ;;  %v660_v12 = vld [vmem:[#allocation8] sm:$0xff]   ;;  %v661_v13 = vld [vmem:[#allocation8 + $0x8] sm:$0xff]  }
  0x4d   :  { %583 = vmatprep.subr.bf16.mxu0 %v806_v0  ;;  %602 = vmatpush3.bf16.msra.mxu1 %v660_v12  ;;  %v662_v14 = vld [vmem:[#allocation8 + $0x10] sm:$0xff]   ;;  %v663_v15 = vld [vmem:[#allocation8 + $0x18] sm:$0xff]   ;;  %v664_v16 = vld [vmem:[#allocation8 + $0x20] sm:$0xff]   ;;  %v954_v47 = vsub.s32 0, %v229_v45  ;;  %vm964_vm1 = vcmp.lt.s32.totalorder %v229_v45, %v244_v54 }
  0x4e   :  { %603 = vmatprep.subr.bf16.mxu1 %v806_v0  ;;  %v665_v17 = vld [vmem:[#allocation8 + $0x28] sm:$0xff]   ;;  %v666_v18 = vld [vmem:[#allocation8 + $0x30] sm:$0xff]   ;;  %v667_v19 = vld [vmem:[#allocation8 + $0x38] sm:$0xff]  }
  0x4f   :  { %v220_v46 = vld [vmem:[%s1016_s3] sm:$0x1]  ;;  %vm539_vm2 = vmpackc.low %vm964_vm1, %vm964_vm1  ;;  %v668_v61 = vld [vmem:[#allocation9] sm:$0xff]  }
  0x50   :  { %584 = vmatpush3.bf16.msra.mxu0 %v653_v3  ;;  %v224_v50 = vld [vmem:[%s1017_s4] sm:$0x1]  ;;  %v669_v62 = vld [vmem:[#allocation9 + $0x8] sm:$0xff]   ;;  %v670_v63 = vld [vmem:[#allocation9 + $0x10] sm:$0xff]  }
  0x51   :  { %585 = vmatprep.subr.bf16.mxu0 %v806_v0  ;;  %604 = vmatpush3.bf16.msra.mxu1 %v661_v13  ;;  %v671_v1 = vld [vmem:[#allocation9 + $0x18] sm:$0xff]   ;;  %v672_v2 = vld [vmem:[#allocation9 + $0x20] sm:$0xff]   ;;  %v673_v3 = vld [vmem:[#allocation9 + $0x28] sm:$0xff]  }
  0x52   :  { %605 = vmatprep.subr.bf16.mxu1 %v806_v0 }
  0x54   :  { %586 = vmatpush3.bf16.msra.mxu0 %v654_v5  ;;  %v675_v5 = vld [vmem:[#allocation9 + $0x38] sm:$0xff]  }
  0x55   :  { %587 = vmatprep.subr.bf16.mxu0 %v806_v0  ;;  %606 = vmatpush3.bf16.msra.mxu1 %v662_v14 }
  0x56   :  { %v677_v4 = vpop.eup %676  ;;  %607 = vmatprep.subr.bf16.mxu1 %v806_v0 }
  0x57   :  { %641 = vpush %v677_v4  ;;  %v674_v4 = vld [vmem:[#allocation9 + $0x30] sm:$0xff]  }
  0x58   :  { %588 = vmatpush3.bf16.msra.mxu0 %v655_v6 }
  0x59   :  { %589 = vmatprep.subr.bf16.mxu0 %v806_v0  ;;  %608 = vmatpush3.bf16.msra.mxu1 %v663_v15 }
  0x5a   :  { %609 = vmatprep.subr.bf16.mxu1 %v806_v0 }
  0x5c   :  { %590 = vmatpush3.bf16.msra.mxu0 %v656_v7 }
  0x5d   :  { %591 = vmatprep.subr.bf16.mxu0 %v806_v0  ;;  %610 = vmatpush3.bf16.msra.mxu1 %v664_v16 }
  0x5e   :  { %611 = vmatprep.subr.bf16.mxu1 %v806_v0 }
  0x60   :  { %592 = vmatpush3.bf16.msra.mxu0 %v657_v8 }
  0x61   :  { %593 = vmatprep.subr.bf16.mxu0 %v806_v0  ;;  %612 = vmatpush3.bf16.msra.mxu1 %v665_v17 }
  0x62   :  { %613 = vmatprep.subr.bf16.mxu1 %v806_v0 }
  0x64   :  { %594 = vmatpush3.bf16.msra.mxu0 %v658_v9 }
  0x65   :  { %595 = vmatprep.subr.bf16.mxu0 %v806_v0  ;;  %614 = vmatpush3.bf16.msra.mxu1 %v666_v18 }
  0x66   :  { %615 = vmatprep.subr.bf16.mxu1 %v806_v0 }
  0x68   :  { %596 = vmatpush3.bf16.msra.mxu0 %v659_v10 }
  0x69   :  { %621 = vmatprep.subr.bf16.mxu0 %v806_v0  ;;  %616 = vmatpush3.bf16.msra.mxu1 %v667_v19 }
  0x6b   :  { %598 = vmatmul.mubr.bf16.vlgmr.msra.gmra.mrb[0].mxu0 %v96_v11 }
  0x6c   :  { %637 = vmatprep.mubr.msk.bf16.mxu0 %vm807_vm0, %v806_v0  ;;  %622 = vmatpush3.bf16.msra.mxu0 %v668_v61 }
  0x6d   :  { %623 = vmatprep.subr.bf16.mxu0 %v806_v0 }
  0x70   :  { %624 = vmatpush3.bf16.msra.mxu0 %v669_v62 }
  0x71   :  { %625 = vmatprep.subr.bf16.mxu0 %v806_v0 }
  0x74   :  { %626 = vmatpush3.bf16.msra.mxu0 %v670_v63 }
  0x75   :  { %627 = vmatprep.subr.bf16.mxu0 %v806_v0 }
  0x78   :  { %628 = vmatpush3.bf16.msra.mxu0 %v671_v1 }
  0x79   :  { %629 = vmatprep.subr.bf16.mxu0 %v806_v0 }
  0x7c   :  { %630 = vmatpush3.bf16.msra.mxu0 %v672_v2 }
  0x7d   :  { %631 = vmatprep.subr.bf16.mxu0 %v806_v0 }
  0x80   :  { %632 = vmatpush3.bf16.msra.mxu0 %v673_v3 }
  0x81   :  { %633 = vmatprep.subr.bf16.mxu0 %v806_v0 }
  0x84   :  { %634 = vmatpush3.bf16.msra.mxu0 %v674_v4 }
  0x85   :  { %635 = vmatprep.subr.bf16.mxu0 %v806_v0 }
  0x88   :  { %s642_s8 = spop %641  ;;  %636 = vmatpush3.bf16.msra.mxu0 %v675_v5 }
  0x89   :  { %v947_v34 = vstv %s642_s8 }
 0x13e   :  { %v195_v20 = vpop.f32.mrb[0].mxu0 }
 0x13f   :  { %v201_v21 = vrot.slane %v195_v20, 4  ;;  %v209_v22 = vmul.f32 %v195_v20, %v195_v20  ;;  %v599_v23 = vpop.f32.mrb[1].mxu0 }
 0x140   :  { %v198_v24 = vpop.f32.mrb[2].mxu0 }
 0x141   :  { %v202_v25 = vadd.f32 %v201_v21, %v195_v20  ;;  %v210_v26 = vrot.slane %v209_v22, 4  ;;  %v600_v27 = vpop.f32.mrb[3].mxu0 }
 0x143   :  { %v203_v28 = vrot.slane %v202_v25, 2  ;;  %v211_v29 = vadd.f32 %v210_v26, %v209_v22 }
 0x145   :  { %v204_v30 = vadd.f32 %v203_v28, %v202_v25  ;;  %v212_v31 = vrot.slane %v211_v29, 2  ;;  %v370_v28 = vld [vmem:[%s1019_s6] sm:$0x1] }
 0x147   :  { %v205_v32 = vrot.slane %v204_v30, 1  ;;  %v213_v33 = vadd.f32 %v212_v31, %v211_v29  ;;  %v374_v31 = vld [vmem:[%s1020_s7] sm:$0x1]  ;;  %s808_s7 = smov [#allocation11]  }
 0x148   :  { %s512_s12 = sshll.u32 %s808_s7, 4  ;;  %s513_s12 = int_to_ptr.vmem [resolvable:$true] %s512_s12 }
 0x149   :  { %v206_v35 = vadd.f32 %v205_v32, %v204_v30  ;;  %v214_v36 = vrot.slane %v213_v33, 1  ;;  %s770_s13 = scalar_lea.vmem %s513_s12, 128  ;;  %p775_p5 = scmp.lt.s32.totalorder %s513_s12, %s513_s12 }
 0x14a   :  { %p771_p4 = scmp.ne.s32.totalorder %s513_s12, %s770_s13  ;;  %p776_p6 = scmp.lt.s32.totalorder %s770_s13, %s770_s13 }
 0x14b   :  { %v208_v37 = vmul.f32 %v947_v34, %v206_v35  ;;  %v215_v38 = vadd.f32 %v214_v36, %v213_v33 }
 0x14c   :  { %p777_p7 = por %p776_p6, %p775_p5 }
 0x14d   :  { %v216_v39 = vmul.f32 %v215_v38, %v947_v34  ;;  %v217_v40 = vmul.f32 %v208_v37, %v208_v37 }
 0x14e   :  { %p778_p8 = pnand %p777_p7, %p771_p4 }
 0x14f   :  { %v218_v41 = vsub.f32 %v216_v39, %v217_v40  ;;  %v542_v40 = vld [vmem:[%s1022_s9] ss:$0 sm:$0xff] }
 0x151   :  { %v219_v42 = vmax.f32 %v218_v41, 0.0 }
 0x153   :  { %v221_v43 = vadd.f32 1e-05, %v219_v42 }
 0x155   :  { %678 = vrsqrt.f32 %v221_v43 }
 0x15f   :  { %v679_v48 = vpop.eup %678 }
 0x160   :  { %v223_v49 = vmul.f32 %v679_v48, %v220_v46 }
 0x162   :  { %v225_v51 = vmul.f32 %v223_v49, %v208_v37  ;;  %v231_v52 = vrot.slane %v223_v49, %v954_v47 }
 0x164   :  { %v226_v53 = vsub.f32 %v224_v50, %v225_v51  ;;  %v233_v55 = vmul.f32 %v231_v52, %v195_v20 }
 0x166   :  { %v238_v56 = vrot.slane %v226_v53, %v954_v47 }
 0x168   :  { %v240_v57 = vadd.f32 %v238_v56, %v233_v55 }
 0x16a   :  { %v241_v59 = vmax.f32 %v240_v57, 0.0 }
 0x16c   :  { %v540_v60 = vpack.c.bf16 %v241_v59, %v241_v59 }
 0x16e   :  { %618 = vmatmul.mubr.msk.bf16.vlgmr.msra.gmra.mrb[0].mxu1 %vm539_vm2, %v540_v60 }
 0x241   :  { %v346_v6 = vpop.f32.mrb[0].mxu1 }
 0x242   :  { %v352_v7 = vrot.slane %v346_v6, 4  ;;  %v359_v8 = vmul.f32 %v346_v6, %v346_v6  ;;  %v619_v9 = vpop.f32.mrb[1].mxu1 }
 0x243   :  { %v349_v10 = vpop.f32.mrb[2].mxu1 }
 0x244   :  { %v353_v11 = vadd.f32 %v352_v7, %v346_v6  ;;  %v360_v12 = vrot.slane %v359_v8, 4  ;;  %v620_v13 = vpop.f32.mrb[3].mxu1 }
 0x246   :  { %v354_v14 = vrot.slane %v353_v11, 2  ;;  %v361_v15 = vadd.f32 %v360_v12, %v359_v8 }
 0x248   :  { %v355_v16 = vadd.f32 %v354_v14, %v353_v11  ;;  %v362_v17 = vrot.slane %v361_v15, 2 }
 0x24a   :  { %v356_v18 = vrot.slane %v355_v16, 1  ;;  %v363_v19 = vadd.f32 %v362_v17, %v361_v15 }
 0x24c   :  { %v357_v20 = vadd.f32 %v356_v18, %v355_v16  ;;  %v364_v21 = vrot.slane %v363_v19, 1 }
 0x24e   :  { %v358_v0 = vmul.f32 %v357_v20, %v947_v34  ;;  %v365_v22 = vadd.f32 %v364_v21, %v363_v19 }
 0x250   :  { %v366_v23 = vmul.f32 %v365_v22, %v947_v34  ;;  %v367_v24 = vmul.f32 %v358_v0, %v358_v0 }
 0x252   :  { %v368_v25 = vsub.f32 %v366_v23, %v367_v24 }
 0x254   :  { %v369_v26 = vmax.f32 %v368_v25, 0.0 }
 0x256   :  { %v371_v27 = vadd.f32 1e-05, %v369_v26 }
 0x258   :  { %680 = vrsqrt.f32 %v371_v27 }
 0x262   :  { %v681_v29 = vpop.eup %680 }
 0x263   :  { %v373_v30 = vmul.f32 %v681_v29, %v370_v28 }
 0x265   :  { %v375_v32 = vmul.f32 %v373_v30, %v358_v0  ;;  %v381_v33 = vrot.slane %v373_v30, %v954_v47 }
 0x267   :  { %v376_v35 = vsub.f32 %v374_v31, %v375_v32  ;;  %v383_v34 = vmul.f32 %v381_v33, %v346_v6 }
 0x269   :  { %v388_v36 = vrot.slane %v376_v35, %v954_v47 }
 0x26b   :  { %v390_v37 = vadd.f32 %v388_v36, %v383_v34 }
 0x26d   :  { %v391_v38 = vmax.f32 %v390_v37, 0.0 }
 0x26f   :  { %v552_v39 = vpack.c.bf16 %v391_v38, %v391_v38 }
 0x271   :  { %638 = vmatmul.mubr.msk.bf16.vlgmr.msra.gmra.mrb[4].mxu0 %vm539_vm2, %v552_v39 }
 0x344   :  { %v499_v41 = vpop.f32.mrb[4].mxu0 }
 0x345   :  { %v500_v42 = vadd.f32 %v542_v40, %v499_v41  ;;  %v639_v43 = vpop.f32.mrb[5].mxu0 }
 0x346   :  { %v502_v44 = vpop.f32.mrb[6].mxu0 }
 0x347   :  { %505 = vst [vmem:[#allocation11] sm:$0xff] %v500_v42  ;;  %v640_v45 = vpop.f32.mrb[7].mxu0 }
 0x348   :  { %781 = shalt.err (!%p778_p8)
}
 0x349   :  { %s782_s9 = scalar_lea.hbm %s1023_s10, 128 }
 0x34a   :  { %p783_p9 = scmp.ne.s32.totalorder %s1023_s10, %s782_s9  ;;  %p786_p10 = scmp.lt.u32.totalorder %s782_s9, %s1023_s10 }
 0x34c   :  { %p788_p11 = pnand %p786_p10, %p783_p9 }
 0x34e   :  { %791 = shalt.err (!%p788_p11)
}
 0x34f   :  { %515 = dma.vmem_to_hbm [thread:$0]  %s513_s12, 128, %s1023_s10, [#allocation5]  }
 0x350   :  { %798 = dma.done.wait [#allocation5], 128  }
 0x351   :  { %799 = vsyncadd [#allocation5], 4294967168 }
 0x352   :  { %519 = vsyncpa [#allocation4], 1 }
 0x353   :  { %520 = vsyncpa [#allocation7], 1 }
 0x354   :  { %521 = vsyncpa [#allocation10], 1 }
 0x355   :  { %522 = vsyncpa [#allocation5], 1 }

</bundles_post_ra>
